<compile_context>
chip_gen: v6e
topology: v6e:2x2x1
jax: 0.10.0
libtpu: 0.0.40
codegen_flags: <defaults>
</compile_context>

<pallas_src>
import functools

import jax
import jax.numpy as jnp
from jax.experimental import pallas as pl
from jax.experimental.pallas import tpu as pltpu

LAYERS = [29, 16, 16, 1]
_LANE = 128
_MAX_TILE_B = 32768      # ~20 MiB VMEM footprint at f32: fits every generation (incl. v7x 64 MiB)
_MIN_MULTI_TILE = 512    # never shrink below this when splitting into multiple grid steps
_TARGET_GRID_STEPS = 4   # >=2 for v7x's two TensorCores, >=4 for pipelining headroom


def _round_up(n, m):
    return ((n + m - 1) // m) * m


def _choose_tile_b(batch, requested):
    """Lane-aligned (multiple of 128) batch tile; batch-aware when not requested."""
    b_aligned = _round_up(batch, _LANE)
    if requested is not None:
        return _round_up(min(requested, b_aligned), _LANE)
    if b_aligned <= 1024:
        # Small batch: single grid step; splitting only adds ~0.35us/step overhead.
        return b_aligned
    tile = _round_up(pl.cdiv(b_aligned, _TARGET_GRID_STEPS), _LANE)
    return max(_MIN_MULTI_TILE, min(_MAX_TILE_B, tile))


def mlp_kernel(x_ref, w1_ref, b1_ref, w2_ref, b2_ref, w3_ref, b3_ref, o_ref):
    """Fused transposed 3-layer MLP on one batch tile.

    x_ref:  (29, TILE_B)  batch on the lane axis (f32 or bf16).
    w*_ref: PyTorch-native (out, in); b*_ref: (out, 1) f32, broadcast along lanes.
    o_ref:  (1, TILE_B)   lane-dense f32 output tile.
    """
    x = x_ref[...]

    h1 = jnp.dot(w1_ref[...], x, preferred_element_type=jnp.float32) + b1_ref[...]
    h1 = jnp.maximum(h1, 0.0)   # ReLU (dropout = identity in eval)

    h2 = jnp.dot(w2_ref[...], h1, preferred_element_type=jnp.float32) + b2_ref[...]
    h2 = jnp.maximum(h2, 0.0)   # ReLU (dropout = identity in eval)

    # TODO(synk): if a v7x bundle dump shows the vmatmul slot saturating, replace this
    # tiny 16->1 matmul with a VPU broadcast-mul + sublane reduce (review item 6).
    # TODO(synk): if a v5e dump shows the single vst slot binding from h1/h2 spills,
    # chunk the lane axis with an unrolled lax.fori_loop (review item 7).
    y = jnp.dot(w3_ref[...], h2, preferred_element_type=jnp.float32) + b3_ref[...]
    o_ref[...] = y.astype(o_ref.dtype)


def _forward_t(xt, params, tile_b):
    """Core: xt is (in_dim, batch) feature-major. Returns (out_dim, batch) f32."""
    (w1, b1), (w2, b2), (w3, b3) = params
    in_dim, batch = xt.shape
    out_dim = w3.shape[0]

    tile = _choose_tile_b(batch, tile_b)
    b_pad = _round_up(batch, tile)
    if b_pad != batch:
        # Lane-axis padding only; fuses into the pallas_call operand (allow_input_fusion).
        xt = jnp.pad(xt, ((0, 0), (0, b_pad - batch)))
    grid = (b_pad // tile,)

    b1c = b1.reshape(-1, 1).astype(jnp.float32)
    b2c = b2.reshape(-1, 1).astype(jnp.float32)
    b3c = b3.reshape(-1, 1).astype(jnp.float32)

    # Constant-index full blocks: weights/biases stay VMEM-resident across grid steps.
    const = lambda a: pl.BlockSpec(a.shape, lambda i: (0,) * a.ndim)

    itemsize = jnp.dtype(xt.dtype).itemsize
    flops = 2 * batch * sum(fi * fo for fi, fo in zip(LAYERS, LAYERS[1:]))
    bytes_accessed = (itemsize * (xt.size + w1.size + w2.size + w3.size)
                      + 4 * (batch * out_dim + b1.size + b2.size + b3.size))
    cost = pl.CostEstimate(flops=flops, transcendentals=0, bytes_accessed=bytes_accessed)

    out = pl.pallas_call(
        mlp_kernel,
        out_shape=jax.ShapeDtypeStruct((out_dim, b_pad), jnp.float32),
        grid=grid,
        in_specs=[
            pl.BlockSpec((in_dim, tile), lambda i: (0, i)),   # x batch tile
            const(w1), const(b1c),
            const(w2), const(b2c),
            const(w3), const(b3c),
        ],
        out_specs=pl.BlockSpec((out_dim, tile), lambda i: (0, i)),
        compiler_params=pltpu.CompilerParams(
            dimension_semantics=("parallel",),   # batch axis shards over v7x's 2 TCs
            allow_input_fusion=[0],              # let XLA fuse transpose/pad into operand 0
            vmem_limit_bytes=64 * 1024 * 1024,   # ample headroom even at TILE_B=32768
        ),
        cost_estimate=cost,
    )(xt, w1, b1c, w2, b2c, w3, b3c)

    return out[:, :batch]


@functools.partial(jax.jit, static_argnames=("tile_b", "use_bf16"))
def basic_network_forward_t(xt, params, tile_b=None, use_bf16=False):
    """Preferred entry: xt is (29, batch) feature-major; returns (1, batch) f32.

    No input-layout conversion at all (perf-review option (a))."""
    if use_bf16:
        xt = xt.astype(jnp.bfloat16)
        params = [(w.astype(jnp.bfloat16), b) for (w, b) in params]
    return _forward_t(xt, params, tile_b)


@functools.partial(jax.jit, static_argnames=("tile_b", "use_bf16"))
def basic_network_forward(x, params, tile_b=None, use_bf16=False):
    """PyTorch-compatible entry: x is (batch, 29) f32; returns (batch, 1) f32."""
    batch = x.shape[0]
    xt = x.T  # layout conversion; eligible to fuse into the pallas_call operand
    if use_bf16:
        xt = xt.astype(jnp.bfloat16)
        params = [(w.astype(jnp.bfloat16), b) for (w, b) in params]
    out = _forward_t(xt, params, tile_b)           # (1, batch)
    return out.T                                   # degenerate-dim transpose (free)


def init_params(key, layers):
    """PyTorch-style init: W:(out,in), b:(out,), U(-1/sqrt(fan_in), 1/sqrt(fan_in))."""
    params = []
    for fan_in, fan_out in zip(layers, layers[1:]):
        key, kw, kb = jax.random.split(key, 3)
        bound = 1.0 / jnp.sqrt(jnp.float32(fan_in))
        w = jax.random.uniform(kw, (fan_out, fan_in), jnp.float32, -bound, bound)
        b = jax.random.uniform(kb, (fan_out,), jnp.float32, -bound, bound)
        params.append((w, b))
    return params


def reference_forward(x, params):
    h = x
    for i, (w, b) in enumerate(params):
        h = h @ w.T + b
        if i < len(params) - 1:
            h = jnp.maximum(h, 0.0)
    return h


if __name__ == "__main__":
    key = jax.random.PRNGKey(0)
    key, kx = jax.random.split(key)
    params = init_params(key, LAYERS)

    # 1) Small batch, PyTorch-layout entry (single grid step).
    batch = 8
    x = jax.random.normal(kx, (batch, LAYERS[0]), jnp.float32)
    out = jax.block_until_ready(basic_network_forward(x, params))
    ref = reference_forward(x, params)
    assert out.shape == (batch, LAYERS[-1]), out.shape
    assert jnp.allclose(out, ref, atol=1e-5, rtol=1e-5), "mismatch (f32, single tile)"

    # 2) Multi-tile grid path (pad to 384 + 3 grid steps).
    key, kx2 = jax.random.split(key)
    batch2 = 300
    x2 = jax.random.normal(kx2, (batch2, LAYERS[0]), jnp.float32)
    out2 = jax.block_until_ready(basic_network_forward(x2, params, tile_b=128))
    ref2 = reference_forward(x2, params)
    assert out2.shape == (batch2, LAYERS[-1]), out2.shape
    assert jnp.allclose(out2, ref2, atol=1e-5, rtol=1e-5), "mismatch (multi-tile)"

    # 3) Feature-major entry (zero layout conversion).
    out3 = jax.block_until_ready(basic_network_forward_t(x.T, params))
    assert out3.shape == (LAYERS[-1], batch), out3.shape
    assert jnp.allclose(out3.T, ref, atol=1e-5, rtol=1e-5), "mismatch (transposed entry)"

    # 4) bf16-input path (halves dominant HBM traffic; looser tolerance vs f32 ref).
    out4 = jax.block_until_ready(basic_network_forward(x, params, use_bf16=True))
    assert out4.shape == (batch, LAYERS[-1]), out4.shape
    assert jnp.allclose(out4, ref, atol=5e-2, rtol=5e-2), "mismatch (bf16 path)"

    print("KERNEL_OK")
</pallas_src>

<mosaic_0001>
module attributes {stable_mosaic.version = 11 : i64} {
  func.func @mlp_kernel(%arg0: i32, %arg1: memref<29x128xf32, #tpu.memory_space<vmem>>, %arg2: memref<16x29xf32, #tpu.memory_space<vmem>>, %arg3: memref<16x1xf32, #tpu.memory_space<vmem>>, %arg4: memref<16x16xf32, #tpu.memory_space<vmem>>, %arg5: memref<16x1xf32, #tpu.memory_space<vmem>>, %arg6: memref<1x16xf32, #tpu.memory_space<vmem>>, %arg7: memref<1x1xf32, #tpu.memory_space<vmem>>, %arg8: memref<1x128xf32, #tpu.memory_space<vmem>>) attributes {dimension_semantics = [#tpu.dimension_semantics<parallel>], iteration_bounds = array<i64: 1>, scalar_prefetch = 0 : i64, scratch_operands = 0 : i64, tpu.core_type = #tpu.core_type<tc>, window_params = [{transform_indices = @transform_0, window_bounds = array<i64: 29, 128>}, {pipeline_mode = #tpu.pipeline_mode<synchronous>, transform_indices = @transform_1, window_bounds = array<i64: 16, 29>}, {pipeline_mode = #tpu.pipeline_mode<synchronous>, transform_indices = @transform_2, window_bounds = array<i64: 16, 1>}, {pipeline_mode = #tpu.pipeline_mode<synchronous>, transform_indices = @transform_3, window_bounds = array<i64: 16, 16>}, {pipeline_mode = #tpu.pipeline_mode<synchronous>, transform_indices = @transform_4, window_bounds = array<i64: 16, 1>}, {pipeline_mode = #tpu.pipeline_mode<synchronous>, transform_indices = @transform_5, window_bounds = array<i64: 1, 16>}, {pipeline_mode = #tpu.pipeline_mode<synchronous>, transform_indices = @transform_6, window_bounds = array<i64: 1, 1>}, {transform_indices = @transform_7, window_bounds = array<i64: 1, 128>}]} {
    %c0 = arith.constant 0 : index
    %c0_0 = arith.constant 0 : index
    %0 = vector.load %arg1[%c0, %c0_0] : memref<29x128xf32, #tpu.memory_space<vmem>>, vector<29x128xf32>
    %c0_1 = arith.constant 0 : index
    %c0_2 = arith.constant 0 : index
    %1 = vector.load %arg2[%c0_1, %c0_2] : memref<16x29xf32, #tpu.memory_space<vmem>>, vector<16x29xf32>
    %cst = arith.constant dense<0.000000e+00> : vector<16x128xf32>
    %2 = tpu.matmul %1, %0, %cst {dimension_numbers = #tpu.dot_dimension_numbers<[1], [0], [0], [1], [0, 0, 1, 1], [], []>} : vector<16x29xf32>, vector<29x128xf32>, vector<16x128xf32> -> vector<16x128xf32>
    %c0_3 = arith.constant 0 : index
    %c0_4 = arith.constant 0 : index
    %3 = vector.load %arg3[%c0_3, %c0_4] : memref<16x1xf32, #tpu.memory_space<vmem>>, vector<16x1xf32>
    %4 = vector.broadcast %3 : vector<16x1xf32> to vector<16x128xf32>
    %5 = arith.addf %2, %4 : vector<16x128xf32>
    %cst_5 = arith.constant 0.000000e+00 : f32
    %6 = vector.broadcast %cst_5 : f32 to vector<16x128xf32>
    %7 = arith.maximumf %5, %6 : vector<16x128xf32>
    %c0_6 = arith.constant 0 : index
    %c0_7 = arith.constant 0 : index
    %8 = vector.load %arg4[%c0_6, %c0_7] : memref<16x16xf32, #tpu.memory_space<vmem>>, vector<16x16xf32>
    %cst_8 = arith.constant dense<0.000000e+00> : vector<16x128xf32>
    %9 = tpu.matmul %8, %7, %cst_8 {dimension_numbers = #tpu.dot_dimension_numbers<[1], [0], [0], [1], [0, 0, 1, 1], [], []>} : vector<16x16xf32>, vector<16x128xf32>, vector<16x128xf32> -> vector<16x128xf32>
    %c0_9 = arith.constant 0 : index
    %c0_10 = arith.constant 0 : index
    %10 = vector.load %arg5[%c0_9, %c0_10] : memref<16x1xf32, #tpu.memory_space<vmem>>, vector<16x1xf32>
    %11 = vector.broadcast %10 : vector<16x1xf32> to vector<16x128xf32>
    %12 = arith.addf %9, %11 : vector<16x128xf32>
    %cst_11 = arith.constant 0.000000e+00 : f32
    %13 = vector.broadcast %cst_11 : f32 to vector<16x128xf32>
    %14 = arith.maximumf %12, %13 : vector<16x128xf32>
    %c0_12 = arith.constant 0 : index
    %c0_13 = arith.constant 0 : index
    %15 = vector.load %arg6[%c0_12, %c0_13] : memref<1x16xf32, #tpu.memory_space<vmem>>, vector<1x16xf32>
    %cst_14 = arith.constant dense<0.000000e+00> : vector<1x128xf32>
    %16 = tpu.matmul %15, %14, %cst_14 {dimension_numbers = #tpu.dot_dimension_numbers<[1], [0], [0], [1], [0, 0, 1, 1], [], []>} : vector<1x16xf32>, vector<16x128xf32>, vector<1x128xf32> -> vector<1x128xf32>
    %c0_15 = arith.constant 0 : index
    %c0_16 = arith.constant 0 : index
    %17 = vector.load %arg7[%c0_15, %c0_16] : memref<1x1xf32, #tpu.memory_space<vmem>>, vector<1x1xf32>
    %18 = vector.broadcast %17 : vector<1x1xf32> to vector<1x128xf32>
    %19 = arith.addf %16, %18 : vector<1x128xf32>
    %c0_17 = arith.constant 0 : index
    %c0_18 = arith.constant 0 : index
    %20 = vector.load %arg8[%c0_17, %c0_18] : memref<1x128xf32, #tpu.memory_space<vmem>>, vector<1x128xf32>
    tpu.vector_store %arg8[%c0_17, %c0_18], %19 {strides = array<i32>} : memref<1x128xf32, #tpu.memory_space<vmem>>, vector<1x128xf32>,
    return
  }
  func.func @transform_0(%arg0: i32) -> (i32, i32) {
    %c0_i32 = arith.constant 0 : i32
    %c0_i32_0 = arith.constant 0 : i32
    return %c0_i32, %arg0 : i32, i32
  }
  func.func @transform_1(%arg0: i32) -> (i32, i32) {
    %c0_i32 = arith.constant 0 : i32
    %c0_i32_0 = arith.constant 0 : i32
    %c0_i32_1 = arith.constant 0 : i32
    return %c0_i32, %c0_i32_0 : i32, i32
  }
  func.func @transform_2(%arg0: i32) -> (i32, i32) {
    %c0_i32 = arith.constant 0 : i32
    %c0_i32_0 = arith.constant 0 : i32
    %c0_i32_1 = arith.constant 0 : i32
    return %c0_i32, %c0_i32_0 : i32, i32
  }
  func.func @transform_3(%arg0: i32) -> (i32, i32) {
    %c0_i32 = arith.constant 0 : i32
    %c0_i32_0 = arith.constant 0 : i32
    %c0_i32_1 = arith.constant 0 : i32
    return %c0_i32, %c0_i32_0 : i32, i32
  }
  func.func @transform_4(%arg0: i32) -> (i32, i32) {
    %c0_i32 = arith.constant 0 : i32
    %c0_i32_0 = arith.constant 0 : i32
    %c0_i32_1 = arith.constant 0 : i32
    return %c0_i32, %c0_i32_0 : i32, i32
  }
  func.func @transform_5(%arg0: i32) -> (i32, i32) {
    %c0_i32 = arith.constant 0 : i32
    %c0_i32_0 = arith.constant 0 : i32
    %c0_i32_1 = arith.constant 0 : i32
    return %c0_i32, %c0_i32_0 : i32, i32
  }
  func.func @transform_6(%arg0: i32) -> (i32, i32) {
    %c0_i32 = arith.constant 0 : i32
    %c0_i32_0 = arith.constant 0 : i32
    %c0_i32_1 = arith.constant 0 : i32
    return %c0_i32, %c0_i32_0 : i32, i32
  }
  func.func @transform_7(%arg0: i32) -> (i32, i32) {
    %c0_i32 = arith.constant 0 : i32
    %c0_i32_0 = arith.constant 0 : i32
    return %c0_i32, %arg0 : i32, i32
  }
}

</mosaic_0001>

<bundles_post_ra>
// kernel: basic_network_forward.1
= control target key start
LH: loop header
LB: loop body
LE: loop exit
PB: predicated region body
PF: predicated region fallthrough
CT: control target
= control target key end

     0   :  { %vm53_vm0 = vcmask 1044480   ;;  %vm46_vm1 = vcmask 236544   ;;  %v370_v2 = vmov 0   ;;  %vm148_vm2 = vcmask 130048   ;;  %s463_s0 = inlined_call_operand.vmem [shape: f32[29,128], index: 0, kind: input, shape index: {}]   ;;  %s464_s1 = inlined_call_operand.vmem [shape: f32[16,29], index: 1, kind: input, shape index: {}]   ;;  %s465_s2 = inlined_call_operand.vmem [shape: f32[16,1], index: 2, kind: input, shape index: {}]   ;;  %s466_s6 = inlined_call_operand.<no memory space> [shape: f32[1,1], index: 6, kind: input, shape index: {}]   ;;  %s467_s3 = inlined_call_operand.vmem [shape: f32[16,16], index: 3, kind: input, shape index: {}]   ;;  %s468_s4 = inlined_call_operand.vmem [shape: f32[16,1], index: 4, kind: input, shape index: {}]   ;;  %s469_s5 = inlined_call_operand.vmem [shape: f32[1,16], index: 5, kind: input, shape index: {}]   ;;  %s470_s7 = inlined_call_operand.vmem [shape: f32[1,128], index: 7, kind: output, shape index: {}]  }
   0x1   :  { %v31_v0 = vld [vmem:[%s463_s0 + $0x18] sm:$0x1f]  ;;  %v30_v1 = vld [vmem:[%s463_s0 + $0x10] sm:$0xff]  ;;  %368 = vset.pattern.permute.xlu0 %v370_v2  ;;  %v12_v3 = vstv %s466_s6  ;;  %369 = vset.pattern.permute.xlu1 %v370_v2  ;;  %v32_v4 = vld [vmem:[%s464_s1] sm:$0xff]  ;;  %v371_v23 = vmov 0.0   ;;  %vm372_vm3 = vmmov 0   ;;  %v239_v33 = vlaneseq }
   0x2   :  { %340 = vmatprep.subr.msk.mxu0 %vm53_vm0, %v31_v0  ;;  %13 = vst [vmem:[#allocation2] sm:$0x1] %v12_v3  ;;  %v29_v5 = vld [vmem:[%s463_s0 + $0x8] sm:$0xff]  ;;  %348 = vmatprep.mubr.msk.f32.mxu0 %vm46_vm1, %v32_v4  ;;  %v28_v7 = vld [vmem:[%s463_s0] sm:$0xff] }
   0x3   :  { %341 = vmatpush3.msk.msra.mxu0 %vm53_vm0, %v31_v0  ;;  %v35_v6 = vld [vmem:[%s465_s2 + $0x8] sm:$0xff]  ;;  %v34_v8 = vld [vmem:[%s465_s2] sm:$0xff]  ;;  %v240_v34 = vshrl.u32 %v239_v33, 7 }
   0x4   :  { %342 = vmatprep.subr.mxu0 %v30_v1  ;;  %43 = vperm.xlu0 %368, %v35_v6   ;;  %v33_v9 = vld [vmem:[%s464_s1 + $0x8] sm:$0xff]  ;;  %v134_v11 = vld [vmem:[%s467_s3] sm:$0xff] }
   0x5   :  { %343 = vmatpush3.msra.mxu0 %v30_v1  ;;  %355 = vmatprep.mubr.msk.f32.mxu1 %vm148_vm2, %v134_v11  ;;  %v137_v12 = vld [vmem:[%s468_s4 + $0x8] sm:$0xff]  ;;  %v136_v13 = vld [vmem:[%s468_s4] sm:$0xff]  ;;  %v241_v35 = vsub.s32 0, %v240_v34 }
   0x6   :  { %344 = vmatprep.subr.mxu0 %v29_v5  ;;  %145 = vperm.xlu1 %369, %v137_v12   ;;  %v135_v22 = vld [vmem:[%s467_s3 + $0x8] sm:$0xff]  ;;  %v232_v32 = vld [vmem:[%s469_s5] sm:$0x1] }
   0x7   :  { %345 = vmatpush3.msra.mxu0 %v29_v5 }
   0x8   :  { %346 = vmatprep.subr.mxu0 %v28_v7  ;;  %38 = vperm.xlu0 %368, %v34_v8  }
   0x9   :  { %347 = vmatpush3.msra.mxu0 %v28_v7  ;;  %v233_v10 = vld [vmem:[#allocation2] sm:$0x1] }
   0xa   :  { %349 = vmatmul.mubr.msk.f32.vlgmr.msra.gmra.mxu0 %vm46_vm1, %v33_v9  ;;  %140 = vperm.xlu1 %369, %v136_v13  }
   0xc   :  { %236 = vperm.xlu0 %368, %v233_v10  }
  0x7f   :  { %v44_v14 = vpop.permute.xlu0 %43 }
  0x81   :  { %v146_v24 = vpop.permute.xlu1 %145 }
  0x83   :  { %v39_v17 = vpop.permute.xlu0 %38 }
  0x85   :  { %v141_v27 = vpop.permute.xlu1 %140 }
  0x87   :  { %v237_v36 = vpop.permute.xlu0 %236 }
  0x88   :  { %v242_v37 = vrot.slane %v237_v36, %v241_v35 }
  0xca   :  { %v350_v15 = vpop.f32.mrf.mxu0 }
  0xcb   :  { %v129_v16 = vadd.f32 %v350_v15, %v44_v14 }
  0xcc   :  { %v123_v18 = vpop.f32.mrf.mxu0 }
  0xcd   :  { %v133_v19 = vmax.f32 %v129_v16, 0.0  ;;  %v124_v20 = vadd.f32 %v123_v18, %v39_v17 }
  0xcf   :  { %v132_v21 = vmax.f32 %v124_v20, 0.0  ;;  %351 = vmatprep.subr.mxu1 %v133_v19 }
  0xd0   :  { %352 = vmatpush3.msra.mxu1 %v133_v19 }
  0xd1   :  { %353 = vmatprep.subr.mxu1 %v132_v21 }
  0xd2   :  { %354 = vmatpush3.msra.mxu1 %v132_v21 }
  0xd3   :  { %356 = vmatmul.mubr.msk.f32.vlgmr.msra.gmra.mxu1 %vm148_vm2, %v135_v22  ;;  %358 = vmatprep.subr.mxu1 %v371_v23 }
  0xd4   :  { %362 = vmatprep.mubr.msk.f32.mxu1 %vm372_vm3, %v371_v23 }
 0x193   :  { %v357_v25 = vpop.f32.mrf.mxu1 }
 0x194   :  { %v227_v26 = vadd.f32 %v357_v25, %v146_v24 }
 0x195   :  { %v221_v28 = vpop.f32.mrf.mxu1 }
 0x196   :  { %v231_v29 = vmax.f32 %v227_v26, 0.0  ;;  %v222_v30 = vadd.f32 %v221_v28, %v141_v27 }
 0x198   :  { %v230_v31 = vmax.f32 %v222_v30, 0.0  ;;  %359 = vmatpush3.msra.mxu1 %v231_v29 }
 0x199   :  { %360 = vmatprep.subr.mxu1 %v371_v23 }
 0x19a   :  { %361 = vmatpush3.msra.mxu1 %v230_v31 }
 0x19b   :  { %363 = vmatmul.mubr.msk.f32.vlgmr.msra.gmra.mxu1 %vm148_vm2, %v232_v32 }
 0x25b   :  { %v312_v38 = vpop.f32.mrf.mxu1 }
 0x25c   :  { %v313_v39 = vadd.f32 %v312_v38, %v242_v37 }
 0x25d   :  { %v364_v40 = vpop.f32.mrf.mxu1 }
 0x25e   :  { %316 = vst [vmem:[%s470_s7] sm:$0x1] %v313_v39 }

</bundles_post_ra>
